<compile_context>
chip_gen: v5e
topology: v5e:2x2
jax: 0.10.0
libtpu: 0.0.40
codegen_flags: <defaults>
</compile_context>

<pallas_src>
import functools

import jax
import jax.numpy as jnp
from jax import lax
from jax.experimental import pallas as pl
from jax.experimental.pallas import tpu as pltpu

_BN_EPS = 1e-5
_K = 3          # kernel_size
_LANE = 128     # TPU lane width


# --------------------------------- the kernel --------------------------------

def conv_block_kernel(x_ref, ml_ref, mr_ref, valid_ref,
                      w1_ref, g1_ref, be1_ref,
                      w2_ref, g2_ref, be2_ref,
                      o_ref, *, inv_count):
    """All operands are VMEM-resident (single block, no grid).

    x_ref:     (Cin, NLP) f32; columns >= N*L are zero padding.
    ml_ref:    (1, NLP)   1.0 where the column has a valid left  neighbour in its sample.
    mr_ref:    (1, NLP)   1.0 where the column has a valid right neighbour in its sample.
    valid_ref: (1, NLP)   1.0 for real columns (< N*L), 0.0 for lane padding.
    w*_ref:    (K, Cout, Cin*) conv weights, tap-major.
    g*/be*:    (Cout, 1)  BatchNorm gamma / beta.
    o_ref:     (Cout, NLP) output; padded columns are garbage-free zeros of the pipeline.
    """
    nlp = x_ref.shape[1]
    ml = ml_ref[...]
    mr = mr_ref[...]
    valid = valid_ref[...]

    def conv_same(a, w_ref):
        # 'a' is zero in padded columns; the boundary masks implement the conv's
        # zero 'same' padding and keep samples from leaking into each other across
        # the flattened N*L lane axis (and across the lane padding).
        a_m1 = pltpu.roll(a, shift=1, axis=1) * ml          # a[:, l-1]
        a_p1 = pltpu.roll(a, shift=nlp - 1, axis=1) * mr    # a[:, l+1]
        y = jnp.dot(w_ref[0], a_m1, preferred_element_type=jnp.float32)
        y = y + jnp.dot(w_ref[1], a, preferred_element_type=jnp.float32)
        y = y + jnp.dot(w_ref[2], a_p1, preferred_element_type=jnp.float32)
        return y

    def bn_elu(y, g_ref, be_ref):
        # Training-mode BatchNorm1d: per-channel batch stats over (N, L), biased var.
        # Padded columns of y are exactly zero, so the raw sum is already correct.
        mean = jnp.sum(y, axis=1, keepdims=True) * inv_count        # (C, 1)
        d = (y - mean) * valid                                      # zero the padding
        var = jnp.sum(d * d, axis=1, keepdims=True) * inv_count     # (C, 1)
        scale = g_ref[...] * lax.rsqrt(var + _BN_EPS)               # folded affine
        z = (d * scale + be_ref[...]) * valid                       # padding stays 0
        # ELU(alpha=1): unselected exp branch is harmless inside the select.
        return jnp.where(z > 0, z, jnp.exp(z) - 1.0)

    a1 = bn_elu(conv_same(x_ref[...], w1_ref), g1_ref, be1_ref)
    a2 = bn_elu(conv_same(a1, w2_ref), g2_ref, be2_ref)
    o_ref[...] = a2.astype(o_ref.dtype)


# --------------------------------- wrapper ------------------------------------

def conv_block(x, params):
    """x: (N, Cin, L) float32.  params = (w1, b1, g1, be1, w2, b2, g2, be2)
    with w1: (Cout, Cin, K), w2: (Cout, Cout, K), rest: (Cout,)."""
    w1, b1, g1, be1, w2, b2, g2, be2 = params
    del b1, b2  # conv bias is cancelled exactly by the BN mean subtraction
    N, Cin, L = x.shape
    Cout = w1.shape[0]
    NL = N * L
    NLP = ((NL + _LANE - 1) // _LANE) * _LANE    # lane-dense width (multiple of 128)

    # ---- layout plumbing (cheap XLA ops outside the kernel) ----
    x_cl = jnp.transpose(x, (1, 0, 2)).reshape(Cin, NL)        # (Cin, N*L), col = n*L + l
    x_cl = jnp.pad(x_cl, ((0, 0), (0, NLP - NL)))              # zero lane padding

    w1_t = jnp.transpose(w1, (2, 0, 1))                        # (K, Cout, Cin), tap-major
    w2_t = jnp.transpose(w2, (2, 0, 1))                        # (K, Cout, Cout)
    col = lambda v: v.reshape(-1, 1).astype(jnp.float32)

    j = jnp.arange(NLP)
    in_range = j < NL
    l_pos = j % L
    row = lambda m: m.astype(jnp.float32)[None, :]
    mask_l = row(in_range & (l_pos != 0))        # has a left neighbour within its sample
    mask_r = row(in_range & (l_pos != L - 1))    # has a right neighbour within its sample
    valid = row(in_range)                        # real (non-padding) column

    args = (x_cl, mask_l, mask_r, valid,
            w1_t, col(g1), col(be1),
            w2_t, col(g2), col(be2))

    # Whole problem is VMEM-resident (single block, no grid); fine for these shapes.
    # TODO(synk): for shapes that exceed VMEM, switch to a gridded two-pass design
    # (stats-accumulation pass + normalize/ELU pass), with tiles budgeted for v7x's
    # 64 MiB VMEM and a 'parallel' grid axis for its two TensorCores.
    flops = 2 * _K * Cout * NLP * (Cin + Cout) + 12 * Cout * NLP
    bytes_accessed = 4 * (Cin * NLP + 3 * NLP + _K * Cout * (Cin + Cout)
                          + 4 * Cout + Cout * NLP)
    cost = pl.CostEstimate(flops=flops,
                           transcendentals=2 * Cout * NLP,
                           bytes_accessed=bytes_accessed)

    out_cl = pl.pallas_call(
        functools.partial(conv_block_kernel, inv_count=1.0 / NL),
        out_shape=jax.ShapeDtypeStruct((Cout, NLP), x.dtype),
        in_specs=[pl.BlockSpec(memory_space=pltpu.MemorySpace.VMEM)] * len(args),
        out_specs=pl.BlockSpec(memory_space=pltpu.MemorySpace.VMEM),
        cost_estimate=cost,
    )(*args)

    # lane-dense (Cout, NLP) -> (N, Cout, L)
    return jnp.transpose(out_cl[:, :NL].reshape(Cout, N, L), (1, 0, 2))


# ------------------------------ pure-JAX reference ----------------------------

def conv_block_ref(x, params):
    w1, b1, g1, be1, w2, b2, g2, be2 = params

    def conv(x, w, b):
        y = lax.conv_general_dilated(x, w, window_strides=(1,), padding='SAME',
                                     dimension_numbers=('NCH', 'OIH', 'NCH'))
        return y + b[None, :, None]

    def bn(y, g, be):
        mean = jnp.mean(y, axis=(0, 2), keepdims=True)
        var = jnp.mean((y - mean) ** 2, axis=(0, 2), keepdims=True)
        return (y - mean) / jnp.sqrt(var + _BN_EPS) * g[None, :, None] + be[None, :, None]

    def elu(y):
        return jnp.where(y > 0, y, jnp.expm1(y))

    y = elu(bn(conv(x, w1, b1), g1, be1))
    y = elu(bn(conv(y, w2, b2), g2, be2))
    return y


# ----------------------------------- main -------------------------------------

if __name__ == "__main__":
    N, Cin, Cout, L = 2, 4, 8, 16

    key = jax.random.PRNGKey(0)
    k1, k2, k3, k4, kx = jax.random.split(key, 5)

    # Deterministic synthetic params (PyTorch-style uniform(-1/sqrt(fan_in), +)).
    bound1 = 1.0 / (Cin * _K) ** 0.5
    bound2 = 1.0 / (Cout * _K) ** 0.5
    w1 = jax.random.uniform(k1, (Cout, Cin, _K), jnp.float32, -bound1, bound1)
    b1 = jax.random.uniform(k2, (Cout,), jnp.float32, -bound1, bound1)
    w2 = jax.random.uniform(k3, (Cout, Cout, _K), jnp.float32, -bound2, bound2)
    b2 = jax.random.uniform(k4, (Cout,), jnp.float32, -bound2, bound2)
    g1 = jnp.ones((Cout,), jnp.float32)
    be1 = jnp.zeros((Cout,), jnp.float32)
    g2 = jnp.ones((Cout,), jnp.float32)
    be2 = jnp.zeros((Cout,), jnp.float32)
    params = (w1, b1, g1, be1, w2, b2, g2, be2)

    x = jax.random.normal(kx, (N, Cin, L), jnp.float32)

    out = conv_block(x, params)
    out = jax.block_until_ready(out)

    ref = jax.block_until_ready(conv_block_ref(x, params))
    assert out.shape == (N, Cout, L)
    assert jnp.allclose(out, ref, atol=1e-4, rtol=1e-4), \
        f"max abs err = {jnp.max(jnp.abs(out - ref))}"

    print("KERNEL_OK")
</pallas_src>

<mosaic_0001>
module attributes {stable_mosaic.version = 11 : i64} {
  func.func @conv_block_kernel(%arg0: memref<4x128xf32, #tpu.memory_space<vmem>>, %arg1: memref<1x128xf32, #tpu.memory_space<vmem>>, %arg2: memref<1x128xf32, #tpu.memory_space<vmem>>, %arg3: memref<1x128xf32, #tpu.memory_space<vmem>>, %arg4: memref<3x8x4xf32, #tpu.memory_space<vmem>>, %arg5: memref<8x1xf32, #tpu.memory_space<vmem>>, %arg6: memref<8x1xf32, #tpu.memory_space<vmem>>, %arg7: memref<3x8x8xf32, #tpu.memory_space<vmem>>, %arg8: memref<8x1xf32, #tpu.memory_space<vmem>>, %arg9: memref<8x1xf32, #tpu.memory_space<vmem>>, %arg10: memref<8x128xf32, #tpu.memory_space<vmem>>) attributes {dimension_semantics = [], scalar_prefetch = 0 : i64, scratch_operands = 0 : i64, tpu.core_type = #tpu.core_type<tc>} {
    %c0 = arith.constant 0 : index
    %c0_0 = arith.constant 0 : index
    %0 = vector.load %arg1[%c0, %c0_0] : memref<1x128xf32, #tpu.memory_space<vmem>>, vector<1x128xf32>
    %c0_1 = arith.constant 0 : index
    %c0_2 = arith.constant 0 : index
    %1 = vector.load %arg2[%c0_1, %c0_2] : memref<1x128xf32, #tpu.memory_space<vmem>>, vector<1x128xf32>
    %c0_3 = arith.constant 0 : index
    %c0_4 = arith.constant 0 : index
    %2 = vector.load %arg3[%c0_3, %c0_4] : memref<1x128xf32, #tpu.memory_space<vmem>>, vector<1x128xf32>
    %c0_5 = arith.constant 0 : index
    %c0_6 = arith.constant 0 : index
    %3 = vector.load %arg0[%c0_5, %c0_6] : memref<4x128xf32, #tpu.memory_space<vmem>>, vector<4x128xf32>
    %c1_i32 = arith.constant 1 : i32
    %4 = tpu.dynamic_rotate %3 by %c1_i32 dim 1 : vector<4x128xf32>, i32 -> vector<4x128xf32>
    %5 = vector.broadcast %0 : vector<1x128xf32> to vector<4x128xf32>
    %6 = arith.mulf %4, %5 : vector<4x128xf32>
    %c127_i32 = arith.constant 127 : i32
    %7 = tpu.dynamic_rotate %3 by %c127_i32 dim 1 : vector<4x128xf32>, i32 -> vector<4x128xf32>
    %8 = vector.broadcast %1 : vector<1x128xf32> to vector<4x128xf32>
    %9 = arith.mulf %7, %8 : vector<4x128xf32>
    %c0_7 = arith.constant 0 : index
    %c0_8 = arith.constant 0 : index
    %c0_9 = arith.constant 0 : index
    %10 = vector.load %arg4[%c0_7, %c0_8, %c0_9] : memref<3x8x4xf32, #tpu.memory_space<vmem>>, vector<1x8x4xf32>
    %11 = vector.shape_cast %10 : vector<1x8x4xf32> to vector<8x4xf32>
    %cst = arith.constant dense<0.000000e+00> : vector<8x128xf32>
    %12 = tpu.matmul %11, %6, %cst {dimension_numbers = #tpu.dot_dimension_numbers<[1], [0], [0], [1], [0, 0, 1, 1], [], []>} : vector<8x4xf32>, vector<4x128xf32>, vector<8x128xf32> -> vector<8x128xf32>
    %c1 = arith.constant 1 : index
    %c0_10 = arith.constant 0 : index
    %c0_11 = arith.constant 0 : index
    %13 = vector.load %arg4[%c1, %c0_10, %c0_11] : memref<3x8x4xf32, #tpu.memory_space<vmem>>, vector<1x8x4xf32>
    %14 = vector.shape_cast %13 : vector<1x8x4xf32> to vector<8x4xf32>
    %cst_12 = arith.constant dense<0.000000e+00> : vector<8x128xf32>
    %15 = tpu.matmul %14, %3, %cst_12 {dimension_numbers = #tpu.dot_dimension_numbers<[1], [0], [0], [1], [0, 0, 1, 1], [], []>} : vector<8x4xf32>, vector<4x128xf32>, vector<8x128xf32> -> vector<8x128xf32>
    %16 = arith.addf %12, %15 : vector<8x128xf32>
    %c2 = arith.constant 2 : index
    %c0_13 = arith.constant 0 : index
    %c0_14 = arith.constant 0 : index
    %17 = vector.load %arg4[%c2, %c0_13, %c0_14] : memref<3x8x4xf32, #tpu.memory_space<vmem>>, vector<1x8x4xf32>
    %18 = vector.shape_cast %17 : vector<1x8x4xf32> to vector<8x4xf32>
    %cst_15 = arith.constant dense<0.000000e+00> : vector<8x128xf32>
    %19 = tpu.matmul %18, %9, %cst_15 {dimension_numbers = #tpu.dot_dimension_numbers<[1], [0], [0], [1], [0, 0, 1, 1], [], []>} : vector<8x4xf32>, vector<4x128xf32>, vector<8x128xf32> -> vector<8x128xf32>
    %20 = arith.addf %16, %19 : vector<8x128xf32>
    %cst_16 = arith.constant dense<0.000000e+00> : vector<8xf32>
    %21 = vector.multi_reduction <add>, %20, %cst_16 [1] : vector<8x128xf32> to vector<8xf32>
    %22 = vector.shape_cast %21 : vector<8xf32> to vector<8x1xf32>
    %cst_17 = arith.constant 3.125000e-02 : f32
    %23 = vector.broadcast %cst_17 : f32 to vector<8x1xf32>
    %24 = arith.mulf %22, %23 : vector<8x1xf32>
    %25 = vector.broadcast %24 : vector<8x1xf32> to vector<8x128xf32>
    %26 = arith.subf %20, %25 : vector<8x128xf32>
    %27 = vector.broadcast %2 : vector<1x128xf32> to vector<8x128xf32>
    %28 = arith.mulf %26, %27 : vector<8x128xf32>
    %29 = arith.mulf %28, %28 : vector<8x128xf32>
    %cst_18 = arith.constant dense<0.000000e+00> : vector<8xf32>
    %30 = vector.multi_reduction <add>, %29, %cst_18 [1] : vector<8x128xf32> to vector<8xf32>
    %31 = vector.shape_cast %30 : vector<8xf32> to vector<8x1xf32>
    %cst_19 = arith.constant 3.125000e-02 : f32
    %32 = vector.broadcast %cst_19 : f32 to vector<8x1xf32>
    %33 = arith.mulf %31, %32 : vector<8x1xf32>
    %c0_20 = arith.constant 0 : index
    %c0_21 = arith.constant 0 : index
    %34 = vector.load %arg5[%c0_20, %c0_21] : memref<8x1xf32, #tpu.memory_space<vmem>>, vector<8x1xf32>
    %cst_22 = arith.constant 9.99999974E-6 : f32
    %35 = vector.broadcast %cst_22 : f32 to vector<8x1xf32>
    %36 = arith.addf %33, %35 : vector<8x1xf32>
    %37 = math.rsqrt %36 : vector<8x1xf32>
    %38 = arith.mulf %34, %37 : vector<8x1xf32>
    %39 = vector.broadcast %38 : vector<8x1xf32> to vector<8x128xf32>
    %40 = arith.mulf %28, %39 : vector<8x128xf32>
    %c0_23 = arith.constant 0 : index
    %c0_24 = arith.constant 0 : index
    %41 = vector.load %arg6[%c0_23, %c0_24] : memref<8x1xf32, #tpu.memory_space<vmem>>, vector<8x1xf32>
    %42 = vector.broadcast %41 : vector<8x1xf32> to vector<8x128xf32>
    %43 = arith.addf %40, %42 : vector<8x128xf32>
    %44 = vector.broadcast %2 : vector<1x128xf32> to vector<8x128xf32>
    %45 = arith.mulf %43, %44 : vector<8x128xf32>
    %cst_25 = arith.constant 0.000000e+00 : f32
    %46 = vector.broadcast %cst_25 : f32 to vector<8x128xf32>
    %47 = arith.cmpf ogt, %45, %46 : vector<8x128xf32>
    %48 = math.exp %45 : vector<8x128xf32>
    %cst_26 = arith.constant 1.000000e+00 : f32
    %49 = vector.broadcast %cst_26 : f32 to vector<8x128xf32>
    %50 = arith.subf %48, %49 : vector<8x128xf32>
    %51 = arith.select %47, %45, %50 : vector<8x128xi1>, vector<8x128xf32>
    %c1_i32_27 = arith.constant 1 : i32
    %52 = tpu.dynamic_rotate %51 by %c1_i32_27 dim 1 : vector<8x128xf32>, i32 -> vector<8x128xf32>
    %53 = vector.broadcast %0 : vector<1x128xf32> to vector<8x128xf32>
    %54 = arith.mulf %52, %53 : vector<8x128xf32>
    %c127_i32_28 = arith.constant 127 : i32
    %55 = tpu.dynamic_rotate %51 by %c127_i32_28 dim 1 : vector<8x128xf32>, i32 -> vector<8x128xf32>
    %56 = vector.broadcast %1 : vector<1x128xf32> to vector<8x128xf32>
    %57 = arith.mulf %55, %56 : vector<8x128xf32>
    %c0_29 = arith.constant 0 : index
    %c0_30 = arith.constant 0 : index
    %c0_31 = arith.constant 0 : index
    %58 = vector.load %arg7[%c0_29, %c0_30, %c0_31] : memref<3x8x8xf32, #tpu.memory_space<vmem>>, vector<1x8x8xf32>
    %59 = vector.shape_cast %58 : vector<1x8x8xf32> to vector<8x8xf32>
    %cst_32 = arith.constant dense<0.000000e+00> : vector<8x128xf32>
    %60 = tpu.matmul %59, %54, %cst_32 {dimension_numbers = #tpu.dot_dimension_numbers<[1], [0], [0], [1], [0, 0, 1, 1], [], []>} : vector<8x8xf32>, vector<8x128xf32>, vector<8x128xf32> -> vector<8x128xf32>
    %c1_33 = arith.constant 1 : index
    %c0_34 = arith.constant 0 : index
    %c0_35 = arith.constant 0 : index
    %61 = vector.load %arg7[%c1_33, %c0_34, %c0_35] : memref<3x8x8xf32, #tpu.memory_space<vmem>>, vector<1x8x8xf32>
    %62 = vector.shape_cast %61 : vector<1x8x8xf32> to vector<8x8xf32>
    %cst_36 = arith.constant dense<0.000000e+00> : vector<8x128xf32>
    %63 = tpu.matmul %62, %51, %cst_36 {dimension_numbers = #tpu.dot_dimension_numbers<[1], [0], [0], [1], [0, 0, 1, 1], [], []>} : vector<8x8xf32>, vector<8x128xf32>, vector<8x128xf32> -> vector<8x128xf32>
    %64 = arith.addf %60, %63 : vector<8x128xf32>
    %c2_37 = arith.constant 2 : index
    %c0_38 = arith.constant 0 : index
    %c0_39 = arith.constant 0 : index
    %65 = vector.load %arg7[%c2_37, %c0_38, %c0_39] : memref<3x8x8xf32, #tpu.memory_space<vmem>>, vector<1x8x8xf32>
    %66 = vector.shape_cast %65 : vector<1x8x8xf32> to vector<8x8xf32>
    %cst_40 = arith.constant dense<0.000000e+00> : vector<8x128xf32>
    %67 = tpu.matmul %66, %57, %cst_40 {dimension_numbers = #tpu.dot_dimension_numbers<[1], [0], [0], [1], [0, 0, 1, 1], [], []>} : vector<8x8xf32>, vector<8x128xf32>, vector<8x128xf32> -> vector<8x128xf32>
    %68 = arith.addf %64, %67 : vector<8x128xf32>
    %cst_41 = arith.constant dense<0.000000e+00> : vector<8xf32>
    %69 = vector.multi_reduction <add>, %68, %cst_41 [1] : vector<8x128xf32> to vector<8xf32>
    %70 = vector.shape_cast %69 : vector<8xf32> to vector<8x1xf32>
    %cst_42 = arith.constant 3.125000e-02 : f32
    %71 = vector.broadcast %cst_42 : f32 to vector<8x1xf32>
    %72 = arith.mulf %70, %71 : vector<8x1xf32>
    %73 = vector.broadcast %72 : vector<8x1xf32> to vector<8x128xf32>
    %74 = arith.subf %68, %73 : vector<8x128xf32>
    %75 = vector.broadcast %2 : vector<1x128xf32> to vector<8x128xf32>
    %76 = arith.mulf %74, %75 : vector<8x128xf32>
    %77 = arith.mulf %76, %76 : vector<8x128xf32>
    %cst_43 = arith.constant dense<0.000000e+00> : vector<8xf32>
    %78 = vector.multi_reduction <add>, %77, %cst_43 [1] : vector<8x128xf32> to vector<8xf32>
    %79 = vector.shape_cast %78 : vector<8xf32> to vector<8x1xf32>
    %cst_44 = arith.constant 3.125000e-02 : f32
    %80 = vector.broadcast %cst_44 : f32 to vector<8x1xf32>
    %81 = arith.mulf %79, %80 : vector<8x1xf32>
    %c0_45 = arith.constant 0 : index
    %c0_46 = arith.constant 0 : index
    %82 = vector.load %arg8[%c0_45, %c0_46] : memref<8x1xf32, #tpu.memory_space<vmem>>, vector<8x1xf32>
    %cst_47 = arith.constant 9.99999974E-6 : f32
    %83 = vector.broadcast %cst_47 : f32 to vector<8x1xf32>
    %84 = arith.addf %81, %83 : vector<8x1xf32>
    %85 = math.rsqrt %84 : vector<8x1xf32>
    %86 = arith.mulf %82, %85 : vector<8x1xf32>
    %87 = vector.broadcast %86 : vector<8x1xf32> to vector<8x128xf32>
    %88 = arith.mulf %76, %87 : vector<8x128xf32>
    %c0_48 = arith.constant 0 : index
    %c0_49 = arith.constant 0 : index
    %89 = vector.load %arg9[%c0_48, %c0_49] : memref<8x1xf32, #tpu.memory_space<vmem>>, vector<8x1xf32>
    %90 = vector.broadcast %89 : vector<8x1xf32> to vector<8x128xf32>
    %91 = arith.addf %88, %90 : vector<8x128xf32>
    %92 = vector.broadcast %2 : vector<1x128xf32> to vector<8x128xf32>
    %93 = arith.mulf %91, %92 : vector<8x128xf32>
    %cst_50 = arith.constant 0.000000e+00 : f32
    %94 = vector.broadcast %cst_50 : f32 to vector<8x128xf32>
    %95 = arith.cmpf ogt, %93, %94 : vector<8x128xf32>
    %96 = math.exp %93 : vector<8x128xf32>
    %cst_51 = arith.constant 1.000000e+00 : f32
    %97 = vector.broadcast %cst_51 : f32 to vector<8x128xf32>
    %98 = arith.subf %96, %97 : vector<8x128xf32>
    %99 = arith.select %95, %93, %98 : vector<8x128xi1>, vector<8x128xf32>
    %c0_52 = arith.constant 0 : index
    %c0_53 = arith.constant 0 : index
    %100 = vector.load %arg10[%c0_52, %c0_53] : memref<8x128xf32, #tpu.memory_space<vmem>>, vector<8x128xf32>
    tpu.vector_store %arg10[%c0_52, %c0_53], %99 {strides = array<i32>} : memref<8x128xf32, #tpu.memory_space<vmem>>, vector<8x128xf32>,
    return
  }
}

</mosaic_0001>

<bundles_post_ra>
// kernel: tpu_custom_call.1
= control target key start
LH: loop header
LB: loop body
LE: loop exit
PB: predicated region body
PF: predicated region fallthrough
CT: control target
= control target key end

     0   :  { %s381_s15 = smov 127   ;;  %s499_s0 = inlined_call_operand.vmem [shape: f32[4,128], index: 0, kind: input, shape index: {}]   ;;  %s500_s1 = inlined_call_operand.vmem [shape: f32[1,128], index: 1, kind: input, shape index: {}]   ;;  %s501_s2 = inlined_call_operand.vmem [shape: f32[1,128], index: 2, kind: input, shape index: {}]   ;;  %s502_s3 = inlined_call_operand.vmem [shape: f32[1,128], index: 3, kind: input, shape index: {}]   ;;  %s503_s4 = inlined_call_operand.vmem [shape: f32[3,8,4], index: 4, kind: input, shape index: {}]   ;;  %s504_s5 = inlined_call_operand.vmem [shape: f32[8,1], index: 5, kind: input, shape index: {}]   ;;  %s505_s6 = inlined_call_operand.vmem [shape: f32[8,1], index: 6, kind: input, shape index: {}]   ;;  %s506_s7 = inlined_call_operand.vmem [shape: f32[3,8,8], index: 7, kind: input, shape index: {}]   ;;  %s507_s8 = inlined_call_operand.vmem [shape: f32[8,1], index: 8, kind: input, shape index: {}]   ;;  %s508_s9 = inlined_call_operand.vmem [shape: f32[8,1], index: 9, kind: input, shape index: {}]   ;;  %s509_s10 = inlined_call_operand.hbm [shape: f32[8,128], index: 10, kind: output, shape index: {}]  }
   0x1   :  { %v39_v0 = vld [vmem:[%s499_s0] sm:$0xf] }
   0x2   :  { %46 = vrot.lane.b32.xlu0 %v39_v0, %s381_s15 }
   0x3   :  { %15 = vsyncpa [#allocation3], 0  ;;  %s382_s16 = smov 1   ;;  %vm59_vm0 = vcmask 1043456   ;;  %vm55_vm1 = vcmask 31744   ;;  %v322_v1 = vld [vmem:[%s503_s4 + $0x8] sm:$0xff] }
   0x4   :  { %323 = vmatpush.msk.msra.mxu0 %vm59_vm0, %v39_v0  ;;  %v451_v2 = vld [vmem:[%s501_s2] ss:$0 sm:$0xff]  ;;  %v327_v5 = vld [vmem:[%s503_s4 + $0x10] sm:$0xff]  ;;  %v383_v21 = vmov 0   ;;  %v331_v44 = vld [vmem:[%s506_s7 + $0x8] sm:$0xff]  ;;  %vm191_vm6 = vcmask 64512  }
   0x5   :  { %324 = vmatmul.msk.f32.vlgmr.msra.gmra.mxu0 %vm55_vm1, %v322_v1  ;;  %v345_v6 = vld [vmem:[%s500_s1] ss:$0 sm:$0xff]  ;;  %341 = vset.pattern.permute.xlu2 %v383_v21  ;;  %v334_v50 = vld [vmem:[%s506_s7 + $0x10] sm:$0xff]  ;;  %s313_s18 = sshll.u32 %s509_s10, 4  ;;  %s314_s18 = int_to_ptr.hbm [resolvable:$true] %s313_s18 }
   0x6   :  { %v52_v9 = vld [vmem:[%s503_s4] sm:$0xff]  ;;  %342 = vset.pattern.permute.xlu1 %v383_v21  ;;  %343 = vset.pattern.permute.xlu0 %v383_v21 }
   0x7   :  { %v466_v17 = vld [vmem:[%s502_s3] ss:$0 sm:$0xff] }
   0x8   :  { %v150_v30 = vld [vmem:[%s504_s5] sm:$0xff] }
   0x9   :  { %v169_v34 = vld [vmem:[%s505_s6] sm:$0xff] }
   0xa   :  { %40 = vrot.lane.b32.xlu0 %v39_v0, %s382_s16  ;;  %v188_v49 = vld [vmem:[%s506_s7] sm:$0xff] }
  0x74   :  { %v47_v3 = vpop.permute.xlu0 %46 }
  0x75   :  { %v51_v4 = vmul.f32 %v451_v2, %v47_v3 }
  0x77   :  { %328 = vmatpush.msk.msra.mxu2 %vm59_vm0, %v51_v4 }
  0x78   :  { %329 = vmatmul.msk.f32.vlgmr.msra.gmra.mxu2 %vm55_vm1, %v327_v5  ;;  %v273_v5 = vld [vmem:[%s507_s8] sm:$0xff] }
  0x7c   :  { %v41_v7 = vpop.permute.xlu0 %40 }
  0x7d   :  { %v45_v8 = vmul.f32 %v345_v6, %v41_v7 }
  0x7f   :  { %325 = vmatpush.msk.msra.mxu1 %vm59_vm0, %v45_v8 }
  0x80   :  { %326 = vmatmul.msk.f32.vlgmr.msra.gmra.mxu1 %vm55_vm1, %v52_v9  ;;  %v292_v9 = vld [vmem:[%s508_s9] sm:$0xff] }
  0x82   :  { %v80_v10 = vpop.f32.mrf.mxu0 }
  0xfb   :  { %v134_v12 = vpop.f32.mrf.mxu2 }
  0xfd   :  { %v106_v11 = vpop.f32.mrf.mxu1 }
  0xfe   :  { %v107_v13 = vadd.f32 %v106_v11, %v80_v10 }
 0x100   :  { %v137_v14 = vadd.f32 %v134_v12, %v107_v13 }
 0x102   :  { %138 = vadd.xlane.f32.xlu1 %v137_v14 }
 0x175   :  { %v139_v15 = vpop.xlane.xlu1 %138 }
 0x176   :  { %v140_v16 = vmul.f32 0.03125, %v139_v15 }
 0x178   :  { %v141_v18 = vsub.f32 %v137_v14, %v140_v16 }
 0x17a   :  { %v145_v19 = vmul.f32 %v466_v17, %v141_v18 }
 0x17c   :  { %v146_v20 = vmul.f32 %v145_v19, %v145_v19 }
 0x17e   :  { %147 = vadd.xlane.f32.xlu1 %v146_v20 }
 0x1f1   :  { %v148_v22 = vpop.xlane.xlu1 %147 }
 0x1f2   :  { %v149_v23 = vmul.f32 0.03125, %v148_v22 }
 0x1f4   :  { %v151_v24 = vadd.f32 1e-05, %v149_v23 }
 0x1f6   :  { %347 = vrsqrt.f32 %v151_v24  ;;  %vm158_vm3 = vweird.f32 %v151_v24 }
 0x1fc   :  { %v348_v25 = vpop.eup %347 }
 0x1fd   :  { %v153_v26 = vmul.f32 %v348_v25, %v151_v24  ;;  %vm159_vm2 = vweird.f32 %v348_v25 }
 0x1fe   :  { %vm160_vm4 = vmor %vm158_vm3, %vm159_vm2 }
 0x1ff   :  { %v154_v27 = vmul.f32 %v348_v25, %v153_v26 }
 0x201   :  { %v155_v28 = vmul.f32 0.5, %v154_v27 }
 0x203   :  { %v156_v29 = vsub.f32 1.5, %v155_v28 }
 0x205   :  { %v157_v31 = vmul.f32 %v348_v25, %v156_v29 }
 0x207   :  { %v161_v32 = vsel %vm160_vm4, %v348_v25, %v157_v31 }
 0x208   :  { %v162_v33 = vmul.f32 %v161_v32, %v150_v30 }
 0x20a   :  { %165 = vperm.xlu2 %341, %v162_v33  }
 0x212   :  { %172 = vperm.xlu2 %341, %v169_v34  }
 0x264   :  { %v166_v35 = vpop.permute.xlu2 %165 }
 0x265   :  { %v168_v36 = vmul.f32 %v166_v35, %v145_v19 }
 0x26c   :  { %v173_v37 = vpop.permute.xlu2 %172 }
 0x26d   :  { %v175_v38 = vadd.f32 %v173_v37, %v168_v36 }
 0x26f   :  { %v176_v39 = vmul.f32 %v466_v17, %v175_v38 }
 0x271   :  { %v178_v40 = vmul.f32 1.442695, %v176_v39  ;;  %vm177_vm5 = vcmp.gt.f32.partialorder %v176_v39, 0.0 }
 0x273   :  { %349 = vpow2.f32 %v178_v40 }
 0x279   :  { %v350_v41 = vpop.eup %349 }
 0x27a   :  { %v330_v42 = vadd.f32 -1.0, %v350_v41 }
 0x27c   :  { %v181_v43 = vsel %vm177_vm5, %v176_v39, %v330_v42 }
 0x27d   :  { %185 = vrot.lane.b32.xlu1 %v181_v43, %s381_s15  ;;  %182 = vrot.lane.b32.xlu0 %v181_v43, %s382_s16  ;;  %s384_s15 = smov [#allocation2]  }
 0x27e   :  { %210 = vmatpush.msra.mxu3 %v181_v43  ;;  %s311_s8 = sshll.u32 %s384_s15, 4  ;;  %s312_s8 = int_to_ptr.vmem [resolvable:$true] %s311_s8 }
 0x27f   :  { %332 = vmatmul.msk.f32.vlgmr.msra.gmra.mxu3 %vm191_vm6, %v331_v44 }
 0x2ef   :  { %v186_v45 = vpop.permute.xlu1 %185  ;;  %v183_v46 = vpop.permute.xlu0 %182 }
 0x2f0   :  { %v187_v47 = vmul.f32 %v451_v2, %v186_v45  ;;  %v184_v48 = vmul.f32 %v345_v6, %v183_v46 }
 0x2f2   :  { %233 = vmatpush.msrb.mxu0 %v184_v48  ;;  %258 = vmatpush.msrb.mxu1 %v187_v47 }
 0x2f3   :  { %333 = vmatmul.msk.f32.vlgmr.msrb.gmra.mxu0 %vm191_vm6, %v188_v49  ;;  %335 = vmatmul.msk.f32.vlgmr.msrb.gmra.mxu1 %vm191_vm6, %v334_v50 }
 0x302   :  { %v212_v51 = vpop.f32.mrf.mxu3 }
 0x370   :  { %v235_v52 = vpop.f32.mrf.mxu0  ;;  %v260_v53 = vpop.f32.mrf.mxu1 }
 0x371   :  { %v236_v54 = vadd.f32 %v235_v52, %v212_v51 }
 0x373   :  { %v263_v55 = vadd.f32 %v260_v53, %v236_v54 }
 0x375   :  { %264 = vadd.xlane.f32.xlu2 %v263_v55 }
 0x3e8   :  { %v265_v56 = vpop.xlane.xlu2 %264 }
 0x3e9   :  { %v266_v57 = vmul.f32 0.03125, %v265_v56 }
 0x3eb   :  { %v267_v58 = vsub.f32 %v263_v55, %v266_v57 }
 0x3ed   :  { %v268_v59 = vmul.f32 %v466_v17, %v267_v58 }
 0x3ef   :  { %v269_v60 = vmul.f32 %v268_v59, %v268_v59 }
 0x3f1   :  { %270 = vadd.xlane.f32.xlu0 %v269_v60 }
 0x464   :  { %v271_v61 = vpop.xlane.xlu0 %270 }
 0x465   :  { %v272_v62 = vmul.f32 0.03125, %v271_v61 }
 0x467   :  { %v274_v63 = vadd.f32 1e-05, %v272_v62 }
 0x469   :  { %351 = vrsqrt.f32 %v274_v63  ;;  %vm281_vm8 = vweird.f32 %v274_v63 }
 0x46f   :  { %v352_v0 = vpop.eup %351 }
 0x470   :  { %v276_v1 = vmul.f32 %v352_v0, %v274_v63  ;;  %vm282_vm7 = vweird.f32 %v352_v0 }
 0x471   :  { %vm283_vm9 = vmor %vm281_vm8, %vm282_vm7 }
 0x472   :  { %v277_v2 = vmul.f32 %v352_v0, %v276_v1 }
 0x474   :  { %v278_v3 = vmul.f32 0.5, %v277_v2 }
 0x476   :  { %v279_v4 = vsub.f32 1.5, %v278_v3 }
 0x478   :  { %v280_v6 = vmul.f32 %v352_v0, %v279_v4 }
 0x47a   :  { %v284_v7 = vsel %vm283_vm9, %v352_v0, %v280_v6 }
 0x47b   :  { %v285_v8 = vmul.f32 %v284_v7, %v273_v5 }
 0x47d   :  { %288 = vperm.xlu1 %342, %v285_v8  }
 0x485   :  { %295 = vperm.xlu1 %342, %v292_v9  }
 0x4ef   :  { %v289_v10 = vpop.permute.xlu1 %288 }
 0x4f0   :  { %v291_v11 = vmul.f32 %v289_v10, %v268_v59 }
 0x4f7   :  { %v296_v12 = vpop.permute.xlu1 %295 }
 0x4f8   :  { %v298_v13 = vadd.f32 %v296_v12, %v291_v11 }
 0x4fa   :  { %v299_v14 = vmul.f32 %v466_v17, %v298_v13 }
 0x4fc   :  { %v301_v15 = vmul.f32 1.442695, %v299_v14  ;;  %vm300_vm10 = vcmp.gt.f32.partialorder %v299_v14, 0.0 }
 0x4fe   :  { %353 = vpow2.f32 %v301_v15 }
 0x504   :  { %v354_v16 = vpop.eup %353 }
 0x505   :  { %v336_v18 = vadd.f32 -1.0, %v354_v16 }
 0x507   :  { %v304_v19 = vsel %vm300_vm10, %v299_v14, %v336_v18 }
 0x508   :  { %305 = vst [vmem:[#allocation2] sm:$0xff] %v304_v19 }
 0x509   :  { %316 = dma.vmem_to_hbm [thread:$0]  %s312_s8, 128, %s314_s18, [#allocation3]  }
 0x50a   :  { %379 = dma.done.wait [#allocation3], 128  }
 0x50b   :  { %380 = vsyncadd [#allocation3], 4294967168 }
 0x50c   :  { %321 = vsyncpa [#allocation3], 1 }

</bundles_post_ra>
